<compile_context>
chip_gen: v5e
topology: v5e:2x2
jax: 0.10.0
libtpu: 0.0.40
codegen_flags: <defaults>
</compile_context>

<pallas_src>
import math

import jax
import jax.numpy as jnp
from jax.experimental import pallas as pl
from jax.experimental.pallas import tpu as pltpu

EPS = 1e-5
FEAT = 4                       # LayerNorm(4)
LANES = 128                    # TPU lane width
GROUPS_PER_ROW = LANES // FEAT # 32 LayerNorm groups per 128-lane row
TILE_ROWS = 2048               # packed rows per block -> 2048*128*4B = 1 MiB (f32)


def _round_up(n, m):
    return ((n + m - 1) // m) * m


def _ln_kernel(x_ref, w_ref, b_ref, o_ref):
    x = x_ref[...].astype(jnp.float32)   # (TR, 128), lane-dense
    w = w_ref[...].astype(jnp.float32)   # (1, 128); lane l holds weight[l % 4]
    b = b_ref[...].astype(jnp.float32)   # (1, 128)

    lane = jax.lax.broadcasted_iota(jnp.int32, (1, LANES), 1)
    m1 = (lane & 1) == 1
    m2 = (lane & 2) == 2

    def group4_sum(v):
        # Segmented butterfly over each aligned group of 4 adjacent lanes;
        # result is the group sum broadcast to every lane of the group.
        # pltpu.roll follows jnp.roll semantics: roll(v, s)[l] = v[l - s].
        p1 = jnp.where(m1, pltpu.roll(v, shift=1, axis=1),
                       pltpu.roll(v, shift=LANES - 1, axis=1))    # v[l ^ 1]
        s1 = v + p1
        p2 = jnp.where(m2, pltpu.roll(s1, shift=2, axis=1),
                       pltpu.roll(s1, shift=LANES - 2, axis=1))   # s1[l ^ 2]
        return s1 + p2

    mean = group4_sum(x) * (1.0 / FEAT)
    xc = x - mean
    var = group4_sum(xc * xc) * (1.0 / FEAT)      # biased variance (torch LN)
    inv = jax.lax.rsqrt(var + EPS)
    # Folded affine: one mul + one add per element on the VPU.
    o_ref[...] = (xc * (inv * w) + b).astype(o_ref.dtype)


def layernorm_pallas(x, weight, bias):
    """LayerNorm over the last dim (size 4). x: (..., 4)."""
    orig_shape = x.shape
    orig_dtype = x.dtype
    assert orig_shape[-1] == FEAT, "LayerNorm(4) expects last dim == 4"
    rows = math.prod(orig_shape[:-1])
    n_elem = rows * FEAT

    # Free reshape of the contiguous buffer into lane-dense packed rows.
    flat = x.reshape(n_elem)
    p = pl.cdiv(n_elem, LANES)                       # packed rows needed
    tr = min(TILE_ROWS, _round_up(p, 8))             # block sublane dim % 8 == 0
    p_pad = _round_up(p, tr)
    pad = p_pad * LANES - n_elem
    if pad:
        flat = jnp.pad(flat, (0, pad))               # zero pad; sliced off below
    xp = flat.reshape(p_pad, LANES)

    # Pre-tile weight/bias to the lane-packed layout: lane l <-> feature l % 4.
    wp = jnp.tile(weight.astype(orig_dtype).reshape(1, FEAT), (1, GROUPS_PER_ROW))
    bp = jnp.tile(bias.astype(orig_dtype).reshape(1, FEAT), (1, GROUPS_PER_ROW))

    grid = (p_pad // tr,)
    out = pl.pallas_call(
        _ln_kernel,
        out_shape=jax.ShapeDtypeStruct((p_pad, LANES), orig_dtype),
        grid_spec=pl.GridSpec(
            grid=grid,
            in_specs=[
                pl.BlockSpec((tr, LANES), lambda i: (i, 0)),
                pl.BlockSpec((1, LANES), lambda i: (0, 0)),
                pl.BlockSpec((1, LANES), lambda i: (0, 0)),
            ],
            out_specs=pl.BlockSpec((tr, LANES), lambda i: (i, 0)),
        ),
        compiler_params=pltpu.CompilerParams(
            dimension_semantics=("parallel",),   # shard rows across TCs on v7x
        ),
    )(xp, wp, bp)

    return out.reshape(-1)[:n_elem].reshape(orig_shape)


if __name__ == "__main__":
    key = jax.random.PRNGKey(0)
    # Small shape consistent with LayerNorm(4): (batch=2, seq=8, hidden=4)
    x = jax.random.normal(key, (2, 8, FEAT), dtype=jnp.float32)

    # Deterministic, non-trivial affine params (exercises the packed w/b path).
    weight = jnp.array([0.5, 1.0, 1.5, 2.0], dtype=jnp.float32)
    bias = jnp.array([0.1, -0.2, 0.3, -0.4], dtype=jnp.float32)

    out = jax.block_until_ready(layernorm_pallas(x, weight, bias))

    # Pure-JAX reference (torch.nn.LayerNorm semantics: biased var, eps inside rsqrt).
    mean = jnp.mean(x, axis=-1, keepdims=True)
    var = jnp.mean((x - mean) ** 2, axis=-1, keepdims=True)
    ref = (x - mean) * jax.lax.rsqrt(var + EPS) * weight + bias
    assert jnp.allclose(out, ref, atol=1e-5, rtol=1e-5), "mismatch vs reference"

    print("KERNEL_OK")
</pallas_src>

<mosaic_0001>
module attributes {stable_mosaic.version = 11 : i64} {
  func.func @_ln_kernel(%arg0: i32, %arg1: memref<8x128xf32, #tpu.memory_space<vmem>>, %arg2: memref<1x128xf32, #tpu.memory_space<vmem>>, %arg3: memref<1x128xf32, #tpu.memory_space<vmem>>, %arg4: memref<8x128xf32, #tpu.memory_space<vmem>>) attributes {dimension_semantics = [#tpu.dimension_semantics<parallel>], iteration_bounds = array<i64: 1>, scalar_prefetch = 0 : i64, scratch_operands = 0 : i64, tpu.core_type = #tpu.core_type<tc>, window_params = [{transform_indices = @transform_0, window_bounds = array<i64: 8, 128>}, {pipeline_mode = #tpu.pipeline_mode<synchronous>, transform_indices = @transform_1, window_bounds = array<i64: 1, 128>}, {pipeline_mode = #tpu.pipeline_mode<synchronous>, transform_indices = @transform_2, window_bounds = array<i64: 1, 128>}, {transform_indices = @transform_3, window_bounds = array<i64: 8, 128>}]} {
    %c0 = arith.constant 0 : index
    %c0_0 = arith.constant 0 : index
    %0 = vector.load %arg1[%c0, %c0_0] : memref<8x128xf32, #tpu.memory_space<vmem>>, vector<8x128xf32>
    %c0_1 = arith.constant 0 : index
    %c0_2 = arith.constant 0 : index
    %1 = vector.load %arg2[%c0_1, %c0_2] : memref<1x128xf32, #tpu.memory_space<vmem>>, vector<1x128xf32>
    %c0_3 = arith.constant 0 : index
    %c0_4 = arith.constant 0 : index
    %2 = vector.load %arg3[%c0_3, %c0_4] : memref<1x128xf32, #tpu.memory_space<vmem>>, vector<1x128xf32>
    %3 = tpu.iota {dimensions = array<i32: 1>} : vector<1x128xi32>
    %c1_i32 = arith.constant 1 : i32
    %4 = vector.broadcast %c1_i32 : i32 to vector<1x128xi32>
    %5 = arith.andi %3, %4 : vector<1x128xi32>
    %c1_i32_5 = arith.constant 1 : i32
    %6 = vector.broadcast %c1_i32_5 : i32 to vector<1x128xi32>
    %7 = arith.cmpi eq, %5, %6 : vector<1x128xi32>
    %c2_i32 = arith.constant 2 : i32
    %8 = vector.broadcast %c2_i32 : i32 to vector<1x128xi32>
    %9 = arith.andi %3, %8 : vector<1x128xi32>
    %c2_i32_6 = arith.constant 2 : i32
    %10 = vector.broadcast %c2_i32_6 : i32 to vector<1x128xi32>
    %11 = arith.cmpi eq, %9, %10 : vector<1x128xi32>
    %c1_i32_7 = arith.constant 1 : i32
    %12 = tpu.dynamic_rotate %0 by %c1_i32_7 dim 1 : vector<8x128xf32>, i32 -> vector<8x128xf32>
    %c127_i32 = arith.constant 127 : i32
    %13 = tpu.dynamic_rotate %0 by %c127_i32 dim 1 : vector<8x128xf32>, i32 -> vector<8x128xf32>
    %14 = vector.shape_cast %7 : vector<1x128xi1> to vector<1x128xi1>
    %15 = vector.broadcast %14 : vector<1x128xi1> to vector<8x128xi1>
    %16 = arith.select %15, %12, %13 : vector<8x128xi1>, vector<8x128xf32>
    %17 = arith.addf %0, %16 : vector<8x128xf32>
    %c2_i32_8 = arith.constant 2 : i32
    %18 = tpu.dynamic_rotate %17 by %c2_i32_8 dim 1 : vector<8x128xf32>, i32 -> vector<8x128xf32>
    %c126_i32 = arith.constant 126 : i32
    %19 = tpu.dynamic_rotate %17 by %c126_i32 dim 1 : vector<8x128xf32>, i32 -> vector<8x128xf32>
    %20 = vector.shape_cast %11 : vector<1x128xi1> to vector<1x128xi1>
    %21 = vector.broadcast %20 : vector<1x128xi1> to vector<8x128xi1>
    %22 = arith.select %21, %18, %19 : vector<8x128xi1>, vector<8x128xf32>
    %23 = arith.addf %17, %22 : vector<8x128xf32>
    %cst = arith.constant 2.500000e-01 : f32
    %24 = vector.broadcast %cst : f32 to vector<8x128xf32>
    %25 = arith.mulf %23, %24 : vector<8x128xf32>
    %26 = arith.subf %0, %25 : vector<8x128xf32>
    %27 = arith.mulf %26, %26 : vector<8x128xf32>
    %c1_i32_9 = arith.constant 1 : i32
    %28 = tpu.dynamic_rotate %27 by %c1_i32_9 dim 1 : vector<8x128xf32>, i32 -> vector<8x128xf32>
    %c127_i32_10 = arith.constant 127 : i32
    %29 = tpu.dynamic_rotate %27 by %c127_i32_10 dim 1 : vector<8x128xf32>, i32 -> vector<8x128xf32>
    %30 = vector.shape_cast %7 : vector<1x128xi1> to vector<1x128xi1>
    %31 = vector.broadcast %30 : vector<1x128xi1> to vector<8x128xi1>
    %32 = arith.select %31, %28, %29 : vector<8x128xi1>, vector<8x128xf32>
    %33 = arith.addf %27, %32 : vector<8x128xf32>
    %c2_i32_11 = arith.constant 2 : i32
    %34 = tpu.dynamic_rotate %33 by %c2_i32_11 dim 1 : vector<8x128xf32>, i32 -> vector<8x128xf32>
    %c126_i32_12 = arith.constant 126 : i32
    %35 = tpu.dynamic_rotate %33 by %c126_i32_12 dim 1 : vector<8x128xf32>, i32 -> vector<8x128xf32>
    %36 = vector.shape_cast %11 : vector<1x128xi1> to vector<1x128xi1>
    %37 = vector.broadcast %36 : vector<1x128xi1> to vector<8x128xi1>
    %38 = arith.select %37, %34, %35 : vector<8x128xi1>, vector<8x128xf32>
    %39 = arith.addf %33, %38 : vector<8x128xf32>
    %cst_13 = arith.constant 2.500000e-01 : f32
    %40 = vector.broadcast %cst_13 : f32 to vector<8x128xf32>
    %41 = arith.mulf %39, %40 : vector<8x128xf32>
    %cst_14 = arith.constant 9.99999974E-6 : f32
    %42 = vector.broadcast %cst_14 : f32 to vector<8x128xf32>
    %43 = arith.addf %41, %42 : vector<8x128xf32>
    %44 = math.rsqrt %43 : vector<8x128xf32>
    %45 = vector.broadcast %1 : vector<1x128xf32> to vector<8x128xf32>
    %46 = arith.mulf %44, %45 : vector<8x128xf32>
    %47 = arith.mulf %26, %46 : vector<8x128xf32>
    %48 = vector.broadcast %2 : vector<1x128xf32> to vector<8x128xf32>
    %49 = arith.addf %47, %48 : vector<8x128xf32>
    %c0_15 = arith.constant 0 : index
    %c0_16 = arith.constant 0 : index
    %50 = vector.load %arg4[%c0_15, %c0_16] : memref<8x128xf32, #tpu.memory_space<vmem>>, vector<8x128xf32>
    tpu.vector_store %arg4[%c0_15, %c0_16], %49 {strides = array<i32>} : memref<8x128xf32, #tpu.memory_space<vmem>>, vector<8x128xf32>,
    return
  }
  func.func @transform_0(%arg0: i32) -> (i32, i32) {
    %c0_i32 = arith.constant 0 : i32
    %c0_i32_0 = arith.constant 0 : i32
    return %arg0, %c0_i32 : i32, i32
  }
  func.func @transform_1(%arg0: i32) -> (i32, i32) {
    %c0_i32 = arith.constant 0 : i32
    %c0_i32_0 = arith.constant 0 : i32
    %c0_i32_1 = arith.constant 0 : i32
    return %c0_i32, %c0_i32_0 : i32, i32
  }
  func.func @transform_2(%arg0: i32) -> (i32, i32) {
    %c0_i32 = arith.constant 0 : i32
    %c0_i32_0 = arith.constant 0 : i32
    %c0_i32_1 = arith.constant 0 : i32
    return %c0_i32, %c0_i32_0 : i32, i32
  }
  func.func @transform_3(%arg0: i32) -> (i32, i32) {
    %c0_i32 = arith.constant 0 : i32
    %c0_i32_0 = arith.constant 0 : i32
    return %arg0, %c0_i32 : i32, i32
  }
}

</mosaic_0001>

<bundles_post_ra>
// kernel: tpu_custom_call.1
= control target key start
LH: loop header
LB: loop body
LE: loop exit
PB: predicated region body
PF: predicated region fallthrough
CT: control target
= control target key end

     0   :  { %8 = vsyncpa [#allocation3], 0  ;;  %s267_s0 = inlined_call_operand.hbm [shape: f32[8,128], index: 0, kind: input, shape index: {}]   ;;  %s268_s1 = inlined_call_operand.hbm [shape: f32[1,128], index: 1, kind: input, shape index: {}]   ;;  %s269_s2 = inlined_call_operand.vmem [shape: f32[1,128], index: 2, kind: input, shape index: {}]   ;;  %s270_s3 = inlined_call_operand.hbm [shape: f32[8,128], index: 3, kind: output, shape index: {}]  }
   0x1   :  { %9 = vsyncpa [#allocation6], 0 }
   0x2   :  { %10 = vsyncpa [#allocation4], 0  ;;  %s16_s14 = sshll.u32 %s267_s0, 4  ;;  %s212_s15 = smov [#allocation2]   ;;  %s17_s14 = int_to_ptr.hbm [resolvable:$true] %s16_s14 }
   0x3   :  { %s18_s16 = sshll.u32 %s212_s15, 4  ;;  %s27_s19 = sshll.u32 %s268_s1, 4  ;;  %s19_s16 = int_to_ptr.vmem [resolvable:$true] %s18_s16  ;;  %s28_s19 = int_to_ptr.hbm [resolvable:$true] %s27_s19 }
   0x4   :  { %21 = dma.hbm_to_vmem [thread:$0]  %s17_s14, 128, %s19_s16, [#allocation3]  }
   0x5   :  { %s213_s20 = smov [#allocation5]  }
   0x6   :  { %s29_s21 = sshll.u32 %s213_s20, 4  ;;  %s30_s21 = int_to_ptr.vmem [resolvable:$true] %s29_s21 }
   0x7   :  { %32 = dma.hbm_to_vmem [thread:$0]  %s28_s19, 16, %s30_s21, [#allocation6]  }
   0x8   :  { %206 = dma.done.wait [#allocation3], 128  }
   0x9   :  { %207 = vsyncadd [#allocation3], 4294967168 }
   0xa   :  { %208 = dma.done.wait [#allocation6], 16  }
   0xb   :  { %209 = vsyncadd [#allocation6], 4294967280  ;;  %v43_v0 = vld [vmem:[#allocation2] sm:$0xff]  ;;  %s214_s0 = smov 1   ;;  %s215_s22 = smov 127   ;;  %v46_v1 = vlaneseq }
   0xc   :  { %52 = vrot.lane.b32.xlu0 %v43_v0, %s214_s0  ;;  %s216_s1 = smov 2   ;;  %s217_s23 = smov 126   ;;  %v130_v33 = vld [vmem:[#allocation5] ss:$0 sm:$0xff]  ;;  %v131_v37 = vld [vmem:[%s269_s2] ss:$0 sm:$0xff] }
   0xd   :  { %v47_v2 = vand.u32 127, %v46_v1  ;;  %s218_s26 = smov [#allocation7]   ;;  %s112_s30 = sshll.u32 %s270_s3, 4  ;;  %s113_s30 = int_to_ptr.hbm [resolvable:$true] %s112_s30 }
   0xe   :  { %s110_s27 = sshll.u32 %s218_s26, 4  ;;  %s111_s27 = int_to_ptr.vmem [resolvable:$true] %s110_s27 }
   0xf   :  { %v48_v4 = vand.u32 1, %v47_v2  ;;  %v50_v10 = vand.u32 2, %v47_v2 }
  0x11   :  { %vm245_vm0 = vcmp.eq.s32.totalorder %v48_v4, 1  ;;  %vm251_vm1 = vcmp.eq.s32.totalorder %v50_v10, 2 }
  0x14   :  { %54 = vrot.lane.b32.xlu0 %v43_v0, %s215_s22 }
  0x7e   :  { %v53_v3 = vpop.permute.xlu0 %52 }
  0x86   :  { %v55_v6 = vpop.permute.xlu0 %54 }
  0x87   :  { %v58_v7 = vsel %vm245_vm0, %v53_v3, %v55_v6 }
  0x88   :  { %v59_v8 = vadd.f32 %v58_v7, %v43_v0 }
  0x8a   :  { %60 = vrot.lane.b32.xlu1 %v59_v8, %s216_s1 }
  0x92   :  { %62 = vrot.lane.b32.xlu1 %v59_v8, %s217_s23 }
  0xfc   :  { %v61_v9 = vpop.permute.xlu1 %60 }
 0x104   :  { %v63_v12 = vpop.permute.xlu1 %62 }
 0x105   :  { %v66_v13 = vsel %vm251_vm1, %v61_v9, %v63_v12 }
 0x106   :  { %v67_v14 = vadd.f32 %v66_v13, %v59_v8 }
 0x108   :  { %v68_v15 = vmul.f32 0.25, %v67_v14 }
 0x10a   :  { %v69_v16 = vsub.f32 %v43_v0, %v68_v15 }
 0x10c   :  { %v70_v17 = vmul.f32 %v69_v16, %v69_v16 }
 0x10e   :  { %71 = vrot.lane.b32.xlu2 %v70_v17, %s214_s0 }
 0x116   :  { %73 = vrot.lane.b32.xlu2 %v70_v17, %s215_s22 }
 0x168   :  { %v72_v18 = vpop.permute.xlu2 %71 }
 0x170   :  { %v74_v19 = vpop.permute.xlu2 %73 }
 0x171   :  { %v75_v20 = vsel %vm245_vm0, %v72_v18, %v74_v19 }
 0x172   :  { %v76_v21 = vadd.f32 %v75_v20, %v70_v17 }
 0x174   :  { %79 = vrot.lane.b32.xlu1 %v76_v21, %s217_s23  ;;  %77 = vrot.lane.b32.xlu0 %v76_v21, %s216_s1 }
 0x1e6   :  { %v80_v22 = vpop.permute.xlu1 %79  ;;  %v78_v23 = vpop.permute.xlu0 %77 }
 0x1e7   :  { %v81_v24 = vsel %vm251_vm1, %v78_v23, %v80_v22 }
 0x1e8   :  { %v82_v25 = vadd.f32 %v81_v24, %v76_v21 }
 0x1ea   :  { %v83_v26 = vmul.f32 0.25, %v82_v25 }
 0x1ec   :  { %v84_v27 = vadd.f32 1e-05, %v83_v26 }
 0x1ee   :  { %132 = vrsqrt.f32 %v84_v27  ;;  %vm91_vm3 = vweird.f32 %v84_v27 }
 0x1f4   :  { %v133_v28 = vpop.eup %132 }
 0x1f5   :  { %v86_v29 = vmul.f32 %v133_v28, %v84_v27  ;;  %vm92_vm2 = vweird.f32 %v133_v28 }
 0x1f6   :  { %vm93_vm4 = vmor %vm91_vm3, %vm92_vm2 }
 0x1f7   :  { %v87_v30 = vmul.f32 %v133_v28, %v86_v29 }
 0x1f9   :  { %v88_v31 = vmul.f32 0.5, %v87_v30 }
 0x1fb   :  { %v89_v32 = vsub.f32 1.5, %v88_v31 }
 0x1fd   :  { %v90_v34 = vmul.f32 %v133_v28, %v89_v32 }
 0x1ff   :  { %v94_v35 = vsel %vm93_vm4, %v133_v28, %v90_v34 }
 0x200   :  { %v98_v36 = vmul.f32 %v130_v33, %v94_v35 }
 0x202   :  { %v99_v38 = vmul.f32 %v98_v36, %v69_v16 }
 0x204   :  { %v103_v39 = vadd.f32 %v131_v37, %v99_v38 }
 0x206   :  { %104 = vst [vmem:[#allocation7] sm:$0xff] %v103_v39 }
 0x207   :  { %115 = dma.vmem_to_hbm [thread:$0]  %s111_s27, 128, %s113_s30, [#allocation4]  }
 0x208   :  { %210 = dma.done.wait [#allocation4], 128  }
 0x209   :  { %211 = vsyncadd [#allocation4], 4294967168 }
 0x20a   :  { %120 = vsyncpa [#allocation3], 1 }
 0x20b   :  { %121 = vsyncpa [#allocation6], 1 }
 0x20c   :  { %122 = vsyncpa [#allocation4], 1 }

</bundles_post_ra>
